<compile_context>
chip_gen: v7x
topology: tpu7x:2x2x1
jax: 0.10.0
libtpu: 0.0.40
codegen_flags: <defaults>
</compile_context>

<pallas_src>
import functools

import jax
import jax.numpy as jnp
from jax.experimental import pallas as pl
from jax.experimental.pallas import tpu as pltpu


def mlp_kernel(x_ref, w1_ref, b1_ref, w2_ref, b2_ref, w3_ref, b3_ref,
               w4_ref, b4_ref, o_ref):
    """Whole MLP hot path on one feature-major batch tile.

    x_ref:   [C,  TB]   (batch on the lane axis)
    w*_ref:  [out, in]  (torch layout), b*_ref: [out, 1]
    o_ref:   [OUT, TB]
    """
    h = x_ref[...]                                                   # [C, TB]

    h = jnp.dot(w1_ref[...], h, preferred_element_type=jnp.float32) + b1_ref[...]
    h = jnp.maximum(h, 0.0)                                          # [2C, TB]

    h = jnp.dot(w2_ref[...], h, preferred_element_type=jnp.float32) + b2_ref[...]
    h = jnp.maximum(h, 0.0)                                          # [2C, TB]

    h = jnp.dot(w3_ref[...], h, preferred_element_type=jnp.float32) + b3_ref[...]
    h = jnp.maximum(h, 0.0)                                          # [C, TB]

    z = jnp.dot(w4_ref[...], h, preferred_element_type=jnp.float32) + b4_ref[...]

    # sigmoid (exp goes to the EUP; divide is cheap at this size)
    o_ref[...] = 1.0 / (1.0 + jnp.exp(-z))                           # [OUT, TB]


@functools.partial(jax.jit, static_argnames=("block_b",))
def mlp_forward(x, params, block_b=512):
    """x: [B, C] float32 (torch-style batch-major).  Returns [B, out_size]."""
    B, C = x.shape
    out_size = params["w4"].shape[0]

    LANE = 128
    # Batch rounded up to a lane multiple; tile is the largest lane-multiple
    # <= block_b that still covers the batch (>=128 so stores stay lane-dense).
    b_min = -(-B // LANE) * LANE
    tb = max(LANE, (min(block_b, b_min) // LANE) * LANE)
    grid_b = -(-b_min // tb)
    b_pad = grid_b * tb

    # Feature-major, zero-padded batch.  (Wrapper-side transpose/pad is layout
    # plumbing; padded columns are sliced off below.)
    xt = jnp.pad(x.T, ((0, 0), (0, b_pad - B)))

    def rep(shape):
        # Same block every grid step (weights/biases stay resident in VMEM).
        return pl.BlockSpec(shape, lambda i: (0, 0))

    out_t = pl.pallas_call(
        mlp_kernel,
        out_shape=jax.ShapeDtypeStruct((out_size, b_pad), jnp.float32),
        grid=(grid_b,),
        in_specs=[
            pl.BlockSpec((C, tb), lambda i: (0, i)),                 # x tile
            rep(params["w1"].shape), rep(params["b1"].shape),
            rep(params["w2"].shape), rep(params["b2"].shape),
            rep(params["w3"].shape), rep(params["b3"].shape),
            rep(params["w4"].shape), rep(params["b4"].shape),
        ],
        out_specs=pl.BlockSpec((out_size, tb), lambda i: (0, i)),
        compiler_params=pltpu.CompilerParams(
            dimension_semantics=("parallel",)),                      # megacore
    )(xt, params["w1"], params["b1"], params["w2"], params["b2"],
      params["w3"], params["b3"], params["w4"], params["b4"])

    return out_t[:, :B].T                                            # [B, OUT]


def xavier_uniform(key, fan_in, fan_out):
    """Matches torch.nn.init.xavier_uniform_; returned torch-style [out, in]."""
    bound = jnp.sqrt(6.0 / (fan_in + fan_out))
    return jax.random.uniform(key, (fan_out, fan_in),
                              minval=-bound, maxval=bound, dtype=jnp.float32)


def init_mlp_params(key, num_channels, out_size, gate_bias_init=0.0):
    dims = [(num_channels, 2 * num_channels),
            (2 * num_channels, 2 * num_channels),
            (2 * num_channels, num_channels),
            (num_channels, out_size)]
    keys = jax.random.split(key, len(dims))
    params = {}
    for idx, ((fi, fo), k) in enumerate(zip(dims, keys), start=1):
        params[f"w{idx}"] = xavier_uniform(k, fi, fo)                # [out, in]
        params[f"b{idx}"] = jnp.full((fo, 1), gate_bias_init, dtype=jnp.float32)
    return params


def mlp_reference(x, params):
    """Pure-JAX reference (torch-equivalent batch-major math)."""
    h = jnp.maximum(x @ params["w1"].T + params["b1"].T, 0.0)
    h = jnp.maximum(h @ params["w2"].T + params["b2"].T, 0.0)
    h = jnp.maximum(h @ params["w3"].T + params["b3"].T, 0.0)
    z = h @ params["w4"].T + params["b4"].T
    return jax.nn.sigmoid(z)


if __name__ == "__main__":
    B, C, OUT = 256, 32, 8           # batch, num_channels, out_size
    key = jax.random.PRNGKey(0)
    kx, kp = jax.random.split(key)

    x = jax.random.normal(kx, (B, C), dtype=jnp.float32)
    params = init_mlp_params(kp, C, OUT)

    # block_b=128 -> grid=(2,): both v7x TensorCores get a parallel step.
    out = mlp_forward(x, params, block_b=128)
    out = jax.block_until_ready(out)

    ref = mlp_reference(x, params)
    assert out.shape == (B, OUT), out.shape
    assert jnp.allclose(out, ref, atol=1e-5, rtol=1e-5), "mismatch vs reference"

    # Non-divisible batch (exercises the padding path).
    x_odd = x[:200]
    out_odd = jax.block_until_ready(mlp_forward(x_odd, params, block_b=128))
    assert out_odd.shape == (200, OUT), out_odd.shape
    assert jnp.allclose(out_odd, mlp_reference(x_odd, params),
                        atol=1e-5, rtol=1e-5), "mismatch on padded batch"

    print("KERNEL_OK")
</pallas_src>

<mosaic_0001>
module attributes {stable_mosaic.version = 11 : i64} {
  func.func @mlp_kernel(%arg0: i32, %arg1: memref<32x128xf32, #tpu.memory_space<vmem>>, %arg2: memref<64x32xf32, #tpu.memory_space<vmem>>, %arg3: memref<64x1xf32, #tpu.memory_space<vmem>>, %arg4: memref<64x64xf32, #tpu.memory_space<vmem>>, %arg5: memref<64x1xf32, #tpu.memory_space<vmem>>, %arg6: memref<32x64xf32, #tpu.memory_space<vmem>>, %arg7: memref<32x1xf32, #tpu.memory_space<vmem>>, %arg8: memref<8x32xf32, #tpu.memory_space<vmem>>, %arg9: memref<8x1xf32, #tpu.memory_space<vmem>>, %arg10: memref<8x128xf32, #tpu.memory_space<vmem>>) attributes {dimension_semantics = [#tpu.dimension_semantics<parallel>], iteration_bounds = array<i64: 2>, scalar_prefetch = 0 : i64, scratch_operands = 0 : i64, tpu.core_type = #tpu.core_type<tc>, window_params = [{transform_indices = @transform_0, window_bounds = array<i64: 32, 128>}, {pipeline_mode = #tpu.pipeline_mode<synchronous>, transform_indices = @transform_1, window_bounds = array<i64: 64, 32>}, {pipeline_mode = #tpu.pipeline_mode<synchronous>, transform_indices = @transform_2, window_bounds = array<i64: 64, 1>}, {pipeline_mode = #tpu.pipeline_mode<synchronous>, transform_indices = @transform_3, window_bounds = array<i64: 64, 64>}, {pipeline_mode = #tpu.pipeline_mode<synchronous>, transform_indices = @transform_4, window_bounds = array<i64: 64, 1>}, {pipeline_mode = #tpu.pipeline_mode<synchronous>, transform_indices = @transform_5, window_bounds = array<i64: 32, 64>}, {pipeline_mode = #tpu.pipeline_mode<synchronous>, transform_indices = @transform_6, window_bounds = array<i64: 32, 1>}, {pipeline_mode = #tpu.pipeline_mode<synchronous>, transform_indices = @transform_7, window_bounds = array<i64: 8, 32>}, {pipeline_mode = #tpu.pipeline_mode<synchronous>, transform_indices = @transform_8, window_bounds = array<i64: 8, 1>}, {transform_indices = @transform_9, window_bounds = array<i64: 8, 128>}]} {
    %c0 = arith.constant 0 : index
    %c0_0 = arith.constant 0 : index
    %0 = vector.load %arg1[%c0, %c0_0] : memref<32x128xf32, #tpu.memory_space<vmem>>, vector<32x128xf32>
    %c0_1 = arith.constant 0 : index
    %c0_2 = arith.constant 0 : index
    %1 = vector.load %arg2[%c0_1, %c0_2] : memref<64x32xf32, #tpu.memory_space<vmem>>, vector<64x32xf32>
    %cst = arith.constant dense<0.000000e+00> : vector<64x128xf32>
    %2 = tpu.matmul %1, %0, %cst {dimension_numbers = #tpu.dot_dimension_numbers<[1], [0], [0], [1], [0, 0, 1, 1], [], []>} : vector<64x32xf32>, vector<32x128xf32>, vector<64x128xf32> -> vector<64x128xf32>
    %c0_3 = arith.constant 0 : index
    %c0_4 = arith.constant 0 : index
    %3 = vector.load %arg3[%c0_3, %c0_4] : memref<64x1xf32, #tpu.memory_space<vmem>>, vector<64x1xf32>
    %4 = vector.broadcast %3 : vector<64x1xf32> to vector<64x128xf32>
    %5 = arith.addf %2, %4 : vector<64x128xf32>
    %cst_5 = arith.constant 0.000000e+00 : f32
    %6 = vector.broadcast %cst_5 : f32 to vector<64x128xf32>
    %7 = arith.maximumf %5, %6 : vector<64x128xf32>
    %c0_6 = arith.constant 0 : index
    %c0_7 = arith.constant 0 : index
    %8 = vector.load %arg4[%c0_6, %c0_7] : memref<64x64xf32, #tpu.memory_space<vmem>>, vector<64x64xf32>
    %cst_8 = arith.constant dense<0.000000e+00> : vector<64x128xf32>
    %9 = tpu.matmul %8, %7, %cst_8 {dimension_numbers = #tpu.dot_dimension_numbers<[1], [0], [0], [1], [0, 0, 1, 1], [], []>} : vector<64x64xf32>, vector<64x128xf32>, vector<64x128xf32> -> vector<64x128xf32>
    %c0_9 = arith.constant 0 : index
    %c0_10 = arith.constant 0 : index
    %10 = vector.load %arg5[%c0_9, %c0_10] : memref<64x1xf32, #tpu.memory_space<vmem>>, vector<64x1xf32>
    %11 = vector.broadcast %10 : vector<64x1xf32> to vector<64x128xf32>
    %12 = arith.addf %9, %11 : vector<64x128xf32>
    %cst_11 = arith.constant 0.000000e+00 : f32
    %13 = vector.broadcast %cst_11 : f32 to vector<64x128xf32>
    %14 = arith.maximumf %12, %13 : vector<64x128xf32>
    %c0_12 = arith.constant 0 : index
    %c0_13 = arith.constant 0 : index
    %15 = vector.load %arg6[%c0_12, %c0_13] : memref<32x64xf32, #tpu.memory_space<vmem>>, vector<32x64xf32>
    %cst_14 = arith.constant dense<0.000000e+00> : vector<32x128xf32>
    %16 = tpu.matmul %15, %14, %cst_14 {dimension_numbers = #tpu.dot_dimension_numbers<[1], [0], [0], [1], [0, 0, 1, 1], [], []>} : vector<32x64xf32>, vector<64x128xf32>, vector<32x128xf32> -> vector<32x128xf32>
    %c0_15 = arith.constant 0 : index
    %c0_16 = arith.constant 0 : index
    %17 = vector.load %arg7[%c0_15, %c0_16] : memref<32x1xf32, #tpu.memory_space<vmem>>, vector<32x1xf32>
    %18 = vector.broadcast %17 : vector<32x1xf32> to vector<32x128xf32>
    %19 = arith.addf %16, %18 : vector<32x128xf32>
    %cst_17 = arith.constant 0.000000e+00 : f32
    %20 = vector.broadcast %cst_17 : f32 to vector<32x128xf32>
    %21 = arith.maximumf %19, %20 : vector<32x128xf32>
    %c0_18 = arith.constant 0 : index
    %c0_19 = arith.constant 0 : index
    %22 = vector.load %arg8[%c0_18, %c0_19] : memref<8x32xf32, #tpu.memory_space<vmem>>, vector<8x32xf32>
    %cst_20 = arith.constant dense<0.000000e+00> : vector<8x128xf32>
    %23 = tpu.matmul %22, %21, %cst_20 {dimension_numbers = #tpu.dot_dimension_numbers<[1], [0], [0], [1], [0, 0, 1, 1], [], []>} : vector<8x32xf32>, vector<32x128xf32>, vector<8x128xf32> -> vector<8x128xf32>
    %c0_21 = arith.constant 0 : index
    %c0_22 = arith.constant 0 : index
    %24 = vector.load %arg9[%c0_21, %c0_22] : memref<8x1xf32, #tpu.memory_space<vmem>>, vector<8x1xf32>
    %25 = vector.broadcast %24 : vector<8x1xf32> to vector<8x128xf32>
    %26 = arith.addf %23, %25 : vector<8x128xf32>
    %cst_23 = arith.constant 0.000000e+00 : f32
    %27 = vector.broadcast %cst_23 : f32 to vector<8x128xf32>
    %28 = arith.subf %27, %26 : vector<8x128xf32>
    %29 = math.exp %28 : vector<8x128xf32>
    %cst_24 = arith.constant 1.000000e+00 : f32
    %30 = vector.broadcast %cst_24 : f32 to vector<8x128xf32>
    %31 = arith.addf %30, %29 : vector<8x128xf32>
    %cst_25 = arith.constant 1.000000e+00 : f32
    %32 = vector.broadcast %cst_25 : f32 to vector<8x128xf32>
    %33 = arith.divf %32, %31 : vector<8x128xf32>
    %c0_26 = arith.constant 0 : index
    %c0_27 = arith.constant 0 : index
    %34 = vector.load %arg10[%c0_26, %c0_27] : memref<8x128xf32, #tpu.memory_space<vmem>>, vector<8x128xf32>
    tpu.vector_store %arg10[%c0_26, %c0_27], %33 {strides = array<i32>} : memref<8x128xf32, #tpu.memory_space<vmem>>, vector<8x128xf32>,
    return
  }
  func.func @transform_0(%arg0: i32) -> (i32, i32) {
    %c0_i32 = arith.constant 0 : i32
    %c0_i32_0 = arith.constant 0 : i32
    return %c0_i32, %arg0 : i32, i32
  }
  func.func @transform_1(%arg0: i32) -> (i32, i32) {
    %c0_i32 = arith.constant 0 : i32
    %c0_i32_0 = arith.constant 0 : i32
    %c0_i32_1 = arith.constant 0 : i32
    return %c0_i32, %c0_i32_0 : i32, i32
  }
  func.func @transform_2(%arg0: i32) -> (i32, i32) {
    %c0_i32 = arith.constant 0 : i32
    %c0_i32_0 = arith.constant 0 : i32
    %c0_i32_1 = arith.constant 0 : i32
    return %c0_i32, %c0_i32_0 : i32, i32
  }
  func.func @transform_3(%arg0: i32) -> (i32, i32) {
    %c0_i32 = arith.constant 0 : i32
    %c0_i32_0 = arith.constant 0 : i32
    %c0_i32_1 = arith.constant 0 : i32
    return %c0_i32, %c0_i32_0 : i32, i32
  }
  func.func @transform_4(%arg0: i32) -> (i32, i32) {
    %c0_i32 = arith.constant 0 : i32
    %c0_i32_0 = arith.constant 0 : i32
    %c0_i32_1 = arith.constant 0 : i32
    return %c0_i32, %c0_i32_0 : i32, i32
  }
  func.func @transform_5(%arg0: i32) -> (i32, i32) {
    %c0_i32 = arith.constant 0 : i32
    %c0_i32_0 = arith.constant 0 : i32
    %c0_i32_1 = arith.constant 0 : i32
    return %c0_i32, %c0_i32_0 : i32, i32
  }
  func.func @transform_6(%arg0: i32) -> (i32, i32) {
    %c0_i32 = arith.constant 0 : i32
    %c0_i32_0 = arith.constant 0 : i32
    %c0_i32_1 = arith.constant 0 : i32
    return %c0_i32, %c0_i32_0 : i32, i32
  }
  func.func @transform_7(%arg0: i32) -> (i32, i32) {
    %c0_i32 = arith.constant 0 : i32
    %c0_i32_0 = arith.constant 0 : i32
    %c0_i32_1 = arith.constant 0 : i32
    return %c0_i32, %c0_i32_0 : i32, i32
  }
  func.func @transform_8(%arg0: i32) -> (i32, i32) {
    %c0_i32 = arith.constant 0 : i32
    %c0_i32_0 = arith.constant 0 : i32
    %c0_i32_1 = arith.constant 0 : i32
    return %c0_i32, %c0_i32_0 : i32, i32
  }
  func.func @transform_9(%arg0: i32) -> (i32, i32) {
    %c0_i32 = arith.constant 0 : i32
    %c0_i32_0 = arith.constant 0 : i32
    return %c0_i32, %arg0 : i32, i32
  }
}

</mosaic_0001>

<bundles_post_ra>
// kernel: mlp_forward.1
= control target key start
LH: loop header
LB: loop body
LE: loop exit
PB: predicated region body
PF: predicated region fallthrough
CT: control target
= control target key end

     0   :  { %14 = vsyncpa [#allocation4], 0  ;;  %s1694_s0 = inlined_call_operand.vmem [shape: f32[32,256], index: 0, kind: input, shape index: {}]   ;;  %s1695_s1 = inlined_call_operand.vmem [shape: f32[64,32], index: 1, kind: input, shape index: {}]   ;;  %s1696_s2 = inlined_call_operand.vmem [shape: f32[64,1], index: 2, kind: input, shape index: {}]   ;;  %s1697_s3 = inlined_call_operand.vmem [shape: f32[64,64], index: 3, kind: input, shape index: {}]   ;;  %s1698_s4 = inlined_call_operand.vmem [shape: f32[64,1], index: 4, kind: input, shape index: {}]   ;;  %s1699_s5 = inlined_call_operand.vmem [shape: f32[32,64], index: 5, kind: input, shape index: {}]   ;;  %s1700_s6 = inlined_call_operand.vmem [shape: f32[32,1], index: 6, kind: input, shape index: {}]   ;;  %s1701_s7 = inlined_call_operand.vmem [shape: f32[8,32], index: 7, kind: input, shape index: {}]   ;;  %s1702_s8 = inlined_call_operand.vmem [shape: f32[8,1], index: 8, kind: input, shape index: {}]   ;;  %s1703_s9 = inlined_call_operand.hbm [shape: f32[8,256], index: 9, kind: output, shape index: {}]  }
   0x1   :  { %16 = vsyncpa [#allocation4 + $0x1], 0  ;;  %s1437_s30 = smov 0   ;;  %s1439_s10 = smov 0  }
   0x2   :  { %s1441_s11 = smov 0   ;;  %s1443_s12 = smov 0  }
   0x3 LB: > { %s1063_s13 = sadd.s32 4294967295, %s1380_s12   ;;  %s1064_s14 = sadd.s32 4294967294, %s1380_s12   ;;  %s1380_s12 = sphi %s1443_s12, %s1709_s12   ;;  %s1376_s11 = sphi %s1441_s11, %s1708_s11   ;;  %s1372_s10 = sphi %s1439_s10, %s1707_s10   ;;  %s1368_s30 = sphi %s1437_s30, %s1706_s30  }
   0x4   : > { %s1460_s15 = sadd.s32 1, %s1380_s12   ;;  %s29_s16 = sadd.s32 1, %s1376_s11 }
   0x5   : > { %s26_s17 = ssub.s32 %s1380_s12, %s1460_s15  ;;  %p36_p0 = scmp.ne.s32.totalorder %s1376_s11, %s1372_s10 }
   0x6   : > { %p27_p1 = scmp.eq.s32.totalorder %s26_s17, 0  ;;  %p37_p2 = scmp.eq.s32.totalorder %s1380_s12, 0 }
   0x7   : > { %p234_p3 = scmp.eq.s32.totalorder %s1063_s13, 1  ;;  %p239_p4 = scmp.ne.s32.totalorder %s1372_s10, %s1368_s30 }
   0x8   : > { %s1473_s18 = scalar_select %p27_p1, %s1376_s11, %s29_s16  }
   0x9   : > { %p38_p5 = por %p37_p2, %p36_p0  ;;  %p1475_p6 = por %p234_p3, %p36_p0 }
   0xa   : > { %p240_p7 = scmp.eq.s32.totalorder %s1064_s14, 1  ;;  %p1066_p9 = scmp.ge.s32.totalorder %s1380_s12, 2 }
   0xc   : > { %p1479_p8 = por %p240_p7, %p239_p4  ;;  %280 = sbr.rel (%p1066_p9) target bundleno = 26 (0x1a), region = 48 }
  0x13   : > { %283 = sbr.rel (!%p38_p5) target bundleno = 26 (0x1a), region = 52  ;;  %s285_s21 = sand.u32 (%p38_p5), 1, %s1376_s11  }
  0x14   : > { %s1068_s22 = sshll.u32 (%p38_p5), %s1380_s12, 3  ;;  %s1067_s23 = sshll.u32 (%p38_p5), %s285_s21, 5 }
  0x15   : > { %s289_s26 = scalar_lea.vmem (%p38_p5), %s1694_s0, %s1068_s22  ;;  %s287_s27 = scalar_lea.vmem (%p38_p5), [#allocation2], %s1067_s23 }
  0x16   : > { %v323_v0 = vld [vmem:[%s289_s26] sm:$0xff] (%p38_p5)  ;;  %v325_v1 = vld [vmem:[%s289_s26 + $0x10] sm:$0xff] (%p38_p5) }
  0x17   : > { %v327_v2 = vld [vmem:[%s289_s26 + $0x20] sm:$0xff] (%p38_p5)  ;;  %324 = vst [vmem:[%s287_s27] sm:$0xff] (%p38_p5), %v323_v0  ;;  %326 = vst [vmem:[%s287_s27 + $0x8] sm:$0xff] (%p38_p5), %v325_v1  ;;  %v329_v3 = vld [vmem:[%s289_s26 + $0x30] sm:$0xff] (%p38_p5) }
  0x18   : > { %328 = vst [vmem:[%s287_s27 + $0x10] sm:$0xff] (%p38_p5), %v327_v2  ;;  %330 = vst [vmem:[%s287_s27 + $0x18] sm:$0xff] (%p38_p5), %v329_v3 }
  0x1a PF: > { %p1069_p10 = scmp.ge.s32.totalorder %s1380_s12, 1  ;;  %p335_p11 = scmp.lt.s32.totalorder %s1380_s12, 3 }
  0x1c   : > { %p336_p12 = pnand %p1069_p10, %p335_p11 }
  0x1d   : > { %s1494_s28 = sand.u32 (!%p336_p12), 1, %s1372_s10   ;;  %v381_v4 = vld [vmem:[%s1695_s1] sm:$0xff] (!%p336_p12)  ;;  %vm437_vm0 = vcmask (!%p336_p12), 261120   ;;  %v1382_v5 = vmov (!%p336_p12), 0   ;;  %v390_v12 = vld [vmem:[%s1696_s2 + $0x8] sm:$0xff] (!%p336_p12)  ;;  %v391_v13 = vld [vmem:[%s1696_s2 + $0x10] sm:$0xff] (!%p336_p12) }
  0x1e   : > { %339 = sbr.rel (%p336_p12) target bundleno = 995 (0x3e3), region = 90  ;;  %s1070_s16 = sshll.u32 (!%p336_p12), %s1494_s28, 5  ;;  %1150 = vmatprep.mubr.msk.f32.mxu0 (!%p336_p12), %vm437_vm0, %v381_v4  ;;  %1312 = vset.pattern.permute.xlu0 (!%p336_p12), %v1382_v5  ;;  %v389_v6 = vld [vmem:[%s1696_s2] sm:$0xff] (!%p336_p12)  ;;  %v392_v15 = vld [vmem:[%s1696_s2 + $0x18] sm:$0xff] (!%p336_p12)  ;;  %v394_v17 = vld [vmem:[%s1696_s2 + $0x28] sm:$0xff] (!%p336_p12)  ;;  %vm631_vm1 = vcmask (!%p336_p12), 523264  }
  0x1f   : > { %1313 = vset.pattern.permute.xlu1 (!%p336_p12), %v1382_v5  ;;  %s344_s22 = scalar_lea.vmem (!%p336_p12), [#allocation2], %s1070_s16  ;;  %399 = vperm.xlu0 (!%p336_p12), %1312, %v389_v6   ;;  %v393_v16 = vld [vmem:[%s1696_s2 + $0x20] sm:$0xff] (!%p336_p12)  ;;  %v382_v18 = vld [vmem:[%s1695_s1 + $0x8] sm:$0xff] (!%p336_p12)  ;;  %v383_v19 = vld [vmem:[%s1695_s1 + $0x10] sm:$0xff] (!%p336_p12)  ;;  %vm1384_vm2 = vmmov (!%p336_p12), 0   ;;  %s1071_s26 = sshll.u32 (!%p336_p12), %s1494_s28, 3 }
  0x20   : > { %v377_v7 = vld [vmem:[%s344_s22] sm:$0xff] (!%p336_p12)  ;;  %v378_v8 = vld [vmem:[%s344_s22 + $0x8] sm:$0xff] (!%p336_p12)  ;;  %v379_v9 = vld [vmem:[%s344_s22 + $0x10] sm:$0xff] (!%p336_p12)  ;;  %409 = vperm.xlu1 (!%p336_p12), %1313, %v391_v13   ;;  %s1094_s27 = sshll.u32 (!%p336_p12), %s1063_s13, 7  ;;  %s376_s29 = scalar_lea.vmem (!%p336_p12), [#allocation3], %s1071_s26 }
  0x21   : > { %v1223_v10 = vpack.c.bf16 (!%p336_p12), %v378_v8, %v377_v7  ;;  %v380_v11 = vld [vmem:[%s344_s22 + $0x18] sm:$0xff] (!%p336_p12)  ;;  %v395_v20 = vld [vmem:[%s1696_s2 + $0x30] sm:$0xff] (!%p336_p12)  ;;  %v385_v23 = vld [vmem:[%s1695_s1 + $0x20] sm:$0xff] (!%p336_p12)  ;;  %s999_s14 = sshll.u32 (!%p336_p12), %s376_s29, 4  ;;  %s1650_s21 = scalar_lea.hbm (!%p336_p12), %s1703_s9, %s1094_s27  ;;  %s1652_s14 = int_to_ptr.vmem [resolvable:$true] %s999_s14 }
  0x22   : > { %v1227_v14 = vpack.c.bf16 (!%p336_p12), %v380_v11, %v379_v9  ;;  %v396_v21 = vld [vmem:[%s1696_s2 + $0x38] sm:$0xff] (!%p336_p12)  ;;  %v583_v24 = vld [vmem:[%s1698_s4] sm:$0xff] (!%p336_p12)  ;;  %v584_v25 = vld [vmem:[%s1698_s4 + $0x8] sm:$0xff] (!%p336_p12)  ;;  %s986_s22 = scalar_lea.sflag (!%p336_p12), [#allocation4], %s1494_s28  ;;  %s1318_s23 = scalar_lea.vmem (!%p336_p12), %s1652_s14, 128 }
  0x23   : > { %1224 = vmatprep.subr.bf16.mxu0 (!%p336_p12), %v1223_v10  ;;  %404 = vperm.xlu0 (!%p336_p12), %1312, %v390_v12   ;;  %v384_v22 = vld [vmem:[%s1695_s1 + $0x18] sm:$0xff] (!%p336_p12)  ;;  %v386_v26 = vld [vmem:[%s1695_s1 + $0x28] sm:$0xff] (!%p336_p12)  ;;  %v387_v27 = vld [vmem:[%s1695_s1 + $0x30] sm:$0xff] (!%p336_p12)  ;;  %p1319_p13 = scmp.ne.s32.totalorder (!%p336_p12), %s1652_s14, %s1318_s23  ;;  %s1386_s13 = smov (!%p336_p12), [#allocation3]  }
  0x24   : > { %1226 = vmatpush3.bf16.msra.mxu0 (!%p336_p12), %v1223_v10  ;;  %414 = vperm.xlu1 (!%p336_p12), %1313, %v392_v15   ;;  %v585_v28 = vld [vmem:[%s1698_s4 + $0x10] sm:$0xff] (!%p336_p12)  ;;  %v586_v29 = vld [vmem:[%s1698_s4 + $0x18] sm:$0xff] (!%p336_p12)  ;;  %v587_v31 = vld [vmem:[%s1698_s4 + $0x20] sm:$0xff] (!%p336_p12)  ;;  %s1322_s24 = sshll.u32 (!%p336_p12), %s1386_s13, 4  ;;  %s1323_s24 = int_to_ptr.vmem [resolvable:$false] %s1322_s24 }
  0x25   : > { %1228 = vmatprep.subr.bf16.mxu0 %v1227_v14  ;;  %v388_v30 = vld [vmem:[%s1695_s1 + $0x38] sm:$0xff]  ;;  %v588_v32 = vld [vmem:[%s1698_s4 + $0x28] sm:$0xff]  ;;  %v589_v33 = vld [vmem:[%s1698_s4 + $0x30] sm:$0xff]  ;;  %p1320_p0 = pnand %p1319_p13, %p1475_p6  ;;  %s1324_s25 = scalar_lea.vmem %s1323_s24, 256 }
  0x26   : > { %v590_v34 = vld [vmem:[%s1698_s4 + $0x38] sm:$0xff]  ;;  %v773_v35 = vld [vmem:[%s1700_s6] sm:$0xff]  ;;  %v774_v36 = vld [vmem:[%s1700_s6 + $0x8] sm:$0xff]  ;;  %p1325_p2 = scmp.lt.s32.totalorder %s1652_s14, %s1323_s24  ;;  %p1326_p3 = scmp.lt.s32.totalorder %s1324_s25, %s1318_s23 }
  0x27   : > { %419 = vperm.xlu0 %1312, %v393_v16   ;;  %v775_v37 = vld [vmem:[%s1700_s6 + $0x10] sm:$0xff]  ;;  %v776_v38 = vld [vmem:[%s1700_s6 + $0x18] sm:$0xff]  ;;  %v899_v39 = vld [vmem:[%s1702_s8] sm:$0xff]  ;;  %p1321_p1 = pneg %p1320_p0 }
  0x28   : > { %1230 = vmatpush3.bf16.msra.mxu0 %v1227_v14  ;;  %424 = vperm.xlu1 %1313, %v394_v17   ;;  %v575_v40 = vld [vmem:[%s1697_s3] sm:$0xff]  ;;  %v576_v13 = vld [vmem:[%s1697_s3 + $0x8] sm:$0xff]  ;;  %v577_v14 = vld [vmem:[%s1697_s3 + $0x10] sm:$0xff]  ;;  %p1327_p4 = por %p1326_p3, %p1325_p2 }
  0x29   : > { %1178 = vmatprep.mubr.msk.f32.mxu1 %vm631_vm1, %v575_v40  ;;  %v578_v15 = vld [vmem:[%s1697_s3 + $0x18] sm:$0xff]  ;;  %v579_v16 = vld [vmem:[%s1697_s3 + $0x20] sm:$0xff]  ;;  %v580_v17 = vld [vmem:[%s1697_s3 + $0x28] sm:$0xff] }
  0x2a   : > { %p1328_p5 = pnand %p1327_p4, %p1321_p1 }
  0x2b   : > { %1151 = vmatmul.mubr.msk.f32.vlgmr.msra.gmra.mrb[0].mxu0 %vm437_vm0, %v382_v18  ;;  %429 = vperm.xlu0 %1312, %v395_v20   ;;  %v581_v18 = vld [vmem:[%s1697_s3 + $0x30] sm:$0xff]  ;;  %v769_v20 = vld [vmem:[%s1699_s5] sm:$0xff] }
  0x2c   : > { %1153 = vmatprep.mubr.msk.f32.mxu0 %vm437_vm0, %v383_v19  ;;  %434 = vperm.xlu1 %1313, %v396_v21   ;;  %v582_v19 = vld [vmem:[%s1697_s3 + $0x38] sm:$0xff] }
  0x2f   : > { %1154 = vmatmul.mubr.msk.f32.gmra.mrb[2].mxu0 %vm437_vm0, %v384_v22  ;;  %593 = vperm.xlu0 %1312, %v583_v24  }
  0x30   : > { %1156 = vmatprep.mubr.msk.f32.mxu0 %vm437_vm0, %v385_v23  ;;  %598 = vperm.xlu1 %1313, %v584_v25  }
  0x33   : > { %1157 = vmatmul.mubr.msk.f32.gmra.mrb[4].mxu0 %vm437_vm0, %v386_v26  ;;  %603 = vperm.xlu0 %1312, %v585_v28  }
  0x34   : > { %1159 = vmatprep.mubr.msk.f32.mxu0 %vm437_vm0, %v387_v27  ;;  %608 = vperm.xlu1 %1313, %v586_v29  }
  0x37   : > { %1160 = vmatmul.mubr.msk.f32.gmra.mrb[6].mxu0 %vm437_vm0, %v388_v30  ;;  %613 = vperm.xlu0 %1312, %v587_v31  }
  0x38   : > { %618 = vperm.xlu1 %1313, %v588_v32   ;;  %1206 = vmatprep.mubr.msk.f32.mxu0 %vm631_vm1, %v769_v20 }
  0x3b   : > { %623 = vperm.xlu0 %1312, %v589_v33  }
  0x3c   : > { %628 = vperm.xlu1 %1313, %v590_v34  }
  0x3f   : > { %779 = vperm.xlu0 %1312, %v773_v35  }
  0x40   : > { %784 = vperm.xlu1 %1313, %v774_v36  }
  0x43   : > { %789 = vperm.xlu0 %1312, %v775_v37  }
  0x44   : > { %794 = vperm.xlu1 %1313, %v776_v38  }
  0x47   : > { %902 = vperm.xlu0 %1312, %v899_v39  }
  0x9e   : > { %v400_v41 = vpop.permute.xlu0 %399 }
  0x9f   : > { %v410_v42 = vpop.permute.xlu1 %409 }
  0xa2   : > { %v405_v43 = vpop.permute.xlu0 %404 }
  0xa3   : > { %v415_v44 = vpop.permute.xlu1 %414 }
  0xa6   : > { %v420_v57 = vpop.permute.xlu0 %419 }
  0xa7   : > { %v425_v54 = vpop.permute.xlu1 %424 }
  0xaa   : > { %v430_v5 = vpop.permute.xlu0 %429 }
  0xab   : > { %v435_v2 = vpop.permute.xlu1 %434 }
  0xae   : > { %v594_v22 = vpop.permute.xlu0 %593 }
  0xaf   : > { %v599_v21 = vpop.permute.xlu1 %598 }
  0xb2   : > { %v604_v25 = vpop.permute.xlu0 %603 }
  0xb3   : > { %v609_v23 = vpop.permute.xlu1 %608 }
  0xb6   : > { %v614_v37 = vpop.permute.xlu0 %613 }
  0xb7   : > { %v619_v34 = vpop.permute.xlu1 %618 }
  0xfe   : > { %v1152_v45 = vpop.f32.mrb[0].mxu0 }
  0xff   : > { %v534_v46 = vadd.f32 %v1152_v45, %v405_v43  ;;  %v528_v47 = vpop.f32.mrb[1].mxu0 }
 0x100   : > { %v529_v48 = vadd.f32 %v528_v47, %v400_v41 }
 0x101   : > { %v568_v49 = vmax.f32 %v534_v46, 0.0  ;;  %v629_v46 = vpop.permute.xlu1 %628 }
 0x102   : > { %v567_v50 = vmax.f32 %v529_v48, 0.0  ;;  %v1155_v51 = vpop.f32.mrb[2].mxu0 }
 0x103   : > { %v544_v52 = vadd.f32 %v1155_v51, %v415_v44  ;;  %v538_v53 = vpop.f32.mrb[3].mxu0 }
 0x104   : > { %v539_v55 = vadd.f32 %v538_v53, %v410_v42  ;;  %v1231_v56 = vpack.c.bf16 %v568_v49, %v567_v50  ;;  %v624_v49 = vpop.permute.xlu0 %623 }
 0x105   : > { %v570_v58 = vmax.f32 %v544_v52, 0.0 }
 0x106   : > { %v569_v59 = vmax.f32 %v539_v55, 0.0  ;;  %v1158_v60 = vpop.f32.mrb[4].mxu0  ;;  %1232 = vmatprep.subr.bf16.mxu1 %v1231_v56 }
 0x107   : > { %v554_v61 = vadd.f32 %v1158_v60, %v425_v54  ;;  %v548_v62 = vpop.f32.mrb[5].mxu0  ;;  %1234 = vmatpush3.bf16.msra.mxu1 %v1231_v56  ;;  %v1383_v60 = vmov 0.0|0.0  }
 0x108   : > { %v1235_v63 = vpack.c.bf16 %v570_v58, %v569_v59  ;;  %v549_v0 = vadd.f32 %v548_v62, %v420_v57  ;;  %v770_v57 = vld [vmem:[%s1699_s5 + $0x8] sm:$0xff]  ;;  %v771_v58 = vld [vmem:[%s1699_s5 + $0x10] sm:$0xff]  ;;  %v772_v59 = vld [vmem:[%s1699_s5 + $0x18] sm:$0xff]  ;;  %v785_v62 = vpop.permute.xlu1 %784 }
 0x109   : > { %v572_v1 = vmax.f32 %v554_v61, 0.0  ;;  %v1385_v61 = vmov 0.0  }
 0x10a   : > { %v571_v3 = vmax.f32 %v549_v0, 0.0  ;;  %v1161_v4 = vpop.f32.mrb[6].mxu0  ;;  %1236 = vmatprep.subr.bf16.mxu1 %v1235_v63 }
 0x10b   : > { %v564_v6 = vadd.f32 %v1161_v4, %v435_v2  ;;  %v558_v7 = vpop.f32.mrb[7].mxu0  ;;  %1238 = vmatpush3.bf16.msra.mxu1 %v1235_v63  ;;  %v780_v63 = vpop.permute.xlu0 %779 }
 0x10c   : > { %v1239_v8 = vpack.c.bf16 %v572_v1, %v571_v3  ;;  %v559_v9 = vadd.f32 %v558_v7, %v430_v5  ;;  %v795_v5 = vpop.permute.xlu1 %794 }
 0x10d   : > { %v574_v10 = vmax.f32 %v564_v6, 0.0 }
 0x10e   : > { %v573_v11 = vmax.f32 %v559_v9, 0.0  ;;  %1240 = vmatprep.subr.bf16.mxu1 %v1239_v8 }
 0x10f   : > { %1242 = vmatpush3.bf16.msra.mxu1 %v1239_v8  ;;  %v790_v8 = vpop.permute.xlu0 %789 }
 0x110   : > { %v1243_v12 = vpack.c.bf16 %v574_v10, %v573_v11 }
 0x112   : > { %1244 = vmatprep.subr.bf16.mxu1 %v1243_v12 }
 0x113   : > { %1246 = vmatpush3.bf16.msra.mxu1 %v1243_v12 }
 0x116   : > { %1179 = vmatmul.mubr.msk.f32.vlgmr.msra.gmra.mrb[0].mxu1 %vm631_vm1, %v576_v13 }
 0x117   : > { %1181 = vmatprep.mubr.msk.f32.mxu1 %vm631_vm1, %v577_v14 }
 0x11a   : > { %1182 = vmatmul.mubr.msk.f32.gmra.mrb[2].mxu1 %vm631_vm1, %v578_v15 }
 0x11b   : > { %1184 = vmatprep.mubr.msk.f32.mxu1 %vm631_vm1, %v579_v16  ;;  %v898_v16 = vld [vmem:[%s1701_s7] sm:$0xff] }
 0x11e   : > { %1185 = vmatmul.mubr.msk.f32.gmra.mrb[4].mxu1 %vm631_vm1, %v580_v17  ;;  %v903_v17 = vpop.permute.xlu0 %902 }
 0x11f   : > { %1187 = vmatprep.mubr.msk.f32.mxu1 %vm631_vm1, %v581_v18 }
 0x122   : > { %1188 = vmatmul.mubr.msk.f32.gmra.mrb[6].mxu1 %vm631_vm1, %v582_v19 }
 0x1e9   : > { %v1180_v24 = vpop.f32.mrb[0].mxu1 }
 0x1ea   : > { %v728_v26 = vadd.f32 %v1180_v24, %v599_v21  ;;  %v722_v27 = vpop.f32.mrb[1].mxu1 }
 0x1eb   : > { %v723_v28 = vadd.f32 %v722_v27, %v594_v22 }
 0x1ec   : > { %v762_v29 = vmax.f32 %v728_v26, 0.0 }
 0x1ed   : > { %v761_v30 = vmax.f32 %v723_v28, 0.0  ;;  %v1183_v31 = vpop.f32.mrb[2].mxu1 }
 0x1ee   : > { %v738_v32 = vadd.f32 %v1183_v31, %v609_v23  ;;  %v732_v33 = vpop.f32.mrb[3].mxu1 }
 0x1ef   : > { %v1247_v35 = vpack.c.bf16 %v762_v29, %v761_v30  ;;  %v733_v36 = vadd.f32 %v732_v33, %v604_v25 }
 0x1f0   : > { %v764_v38 = vmax.f32 %v738_v32, 0.0 }
 0x1f1   : > { %v763_v39 = vmax.f32 %v733_v36, 0.0  ;;  %v1186_v40 = vpop.f32.mrb[4].mxu1  ;;  %1248 = vmatprep.subr.bf16.mxu0 %v1247_v35 }
 0x1f2   : > { %v748_v41 = vadd.f32 %v1186_v40, %v619_v34  ;;  %v742_v42 = vpop.f32.mrb[5].mxu1  ;;  %1250 = vmatpush3.bf16.msra.mxu0 %v1247_v35 }
 0x1f3   : > { %v1251_v43 = vpack.c.bf16 %v764_v38, %v763_v39  ;;  %v743_v44 = vadd.f32 %v742_v42, %v614_v37 }
 0x1f4   : > { %v766_v45 = vmax.f32 %v748_v41, 0.0 }
 0x1f5   : > { %v765_v47 = vmax.f32 %v743_v44, 0.0  ;;  %v1189_v48 = vpop.f32.mrb[6].mxu1  ;;  %1252 = vmatprep.subr.bf16.mxu0 %v1251_v43 }
 0x1f6   : > { %v758_v50 = vadd.f32 %v1189_v48, %v629_v46  ;;  %v752_v51 = vpop.f32.mrb[7].mxu1  ;;  %1254 = vmatpush3.bf16.msra.mxu0 %v1251_v43 }
 0x1f7   : > { %v1255_v52 = vpack.c.bf16 %v766_v45, %v765_v47  ;;  %v753_v53 = vadd.f32 %v752_v51, %v624_v49 }
 0x1f8   : > { %v768_v54 = vmax.f32 %v758_v50, 0.0 }
 0x1f9   : > { %v767_v55 = vmax.f32 %v753_v53, 0.0  ;;  %1256 = vmatprep.subr.bf16.mxu0 %v1255_v52 }
 0x1fa   : > { %1258 = vmatpush3.bf16.msra.mxu0 %v1255_v52 }
 0x1fb   : > { %v1259_v56 = vpack.c.bf16 %v768_v54, %v767_v55 }
 0x1fd   : > { %1260 = vmatprep.subr.bf16.mxu0 %v1259_v56 }
 0x1fe   : > { %1262 = vmatpush3.bf16.msra.mxu0 %v1259_v56 }
 0x1ff   : > { %1263 = vmatprep.subr.bf16.mxu0 %v1383_v60 }
 0x201   : > { %1207 = vmatmul.mubr.msk.f32.vlgmr.msra.gmra.mrb[8].mxu0 %vm631_vm1, %v770_v57 }
 0x202   : > { %1209 = vmatprep.mubr.msk.f32.mxu0 %vm631_vm1, %v771_v58 }
 0x205   : > { %1210 = vmatmul.mubr.msk.f32.gmra.mrb[10].mxu0 %vm631_vm1, %v772_v59 }
 0x206   : > { %1220 = vmatprep.mubr.msk.f32.mxu0 %vm1384_vm2, %v1385_v61 }
 0x2d4   : > { %v1208_v0 = vpop.f32.mrb[8].mxu0 }
 0x2d5   : > { %v881_v1 = vadd.f32 %v1208_v0, %v785_v62  ;;  %v875_v2 = vpop.f32.mrb[9].mxu0 }
 0x2d6   : > { %v876_v3 = vadd.f32 %v875_v2, %v780_v63 }
 0x2d7   : > { %v895_v4 = vmax.f32 %v881_v1, 0.0 }
 0x2d8   : > { %v894_v6 = vmax.f32 %v876_v3, 0.0  ;;  %v1211_v7 = vpop.f32.mrb[10].mxu0 }
 0x2d9   : > { %v891_v9 = vadd.f32 %v1211_v7, %v795_v5  ;;  %v885_v10 = vpop.f32.mrb[11].mxu0 }
 0x2da   : > { %v1264_v11 = vpack.c.bf16 %v895_v4, %v894_v6  ;;  %v886_v12 = vadd.f32 %v885_v10, %v790_v8 }
 0x2db   : > { %v897_v13 = vmax.f32 %v891_v9, 0.0 }
 0x2dc   : > { %v896_v14 = vmax.f32 %v886_v12, 0.0  ;;  %1265 = vmatpush3.bf16.msra.mxu0 %v1264_v11 }
 0x2dd   : > { %1266 = vmatprep.subr.bf16.mxu0 %v1383_v60 }
 0x2de   : > { %v1267_v15 = vpack.c.bf16 %v897_v13, %v896_v14 }
 0x2e0   : > { %1268 = vmatpush3.bf16.msra.mxu0 %v1267_v15 }
 0x2e3   : > { %1221 = vmatmul.mubr.msk.f32.vlgmr.msra.gmra.mrb[12].mxu0 %vm437_vm0, %v898_v16 }
 0x3b6   : > { %v974_v18 = vpop.f32.mrb[12].mxu0 }
 0x3b7   : > { %v975_v19 = vadd.f32 %v974_v18, %v903_v17  ;;  %v1222_v20 = vpop.f32.mrb[13].mxu0 }
 0x3b9   : > { %v978_v21 = vsub.f32 0.0, %v975_v19 }
 0x3bb   : > { %v979_v22 = vmul.f32 1.442695, %v978_v21 }
 0x3bd   : > { %1314 = vpow2.f32 %v979_v22 }
 0x3c7   : > { %v1315_v23 = vpop.eup %1314 }
 0x3c8   : > { %v981_v24 = vadd.f32 1.0, %v1315_v23 }
 0x3ca   : > { %1316 = vrcp.f32 %v981_v24 }
 0x3d4   : > { %v1317_v25 = vpop.eup %1316 }
 0x3d5   : > { %984 = vst [vmem:[%s376_s29] sm:$0xff] %v1317_v25 }
 0x3d6   : > { %1331 = shalt.err (!%p1328_p5)
}
 0x3d7   : > { %s1332_s28 = scalar_lea.hbm %s1650_s21, 128  ;;  %s1336_s29 = scalar_lea.hbm %s1703_s9, 256 }
 0x3d8   : > { %p1333_p7 = scmp.ne.s32.totalorder %s1650_s21, %s1332_s28  ;;  %p1337_p12 = scmp.lt.u32.totalorder %s1650_s21, %s1703_s9 }
 0x3d9   : > { %p1338_p13 = scmp.lt.u32.totalorder %s1336_s29, %s1332_s28  ;;  %p1340_p1 = scmp.lt.u32.totalorder %s1332_s28, %s1650_s21 }
 0x3da   : > { %p1334_p10 = pnand %p1333_p7, %p1475_p6 }
 0x3db   : > { %p1339_p0 = por %p1338_p13, %p1337_p12 }
 0x3dc   : > { %p1335_p11 = pneg %p1334_p10 }
 0x3dd   : > { %p1341_p2 = por %p1340_p1, %p1339_p0 }
 0x3df   : > { %p1342_p3 = pnand %p1341_p2, %p1335_p11 }
 0x3e1   : > { %1345 = shalt.err (!%p1342_p3)
}
 0x3e2   : > { %1269 = dma.vmem_to_hbm [thread:$0]  (%p1475_p6), %s1652_s14, 128, %s1650_s21, %s986_s22  }
 0x3e3 PF: > { %s1011_s23 = sand.u32 1, %s1368_s30   ;;  %p1272_p4 = pnand %p1066_p9, %p1479_p8 }
 0x3e4   : > { %s1012_s13 = scalar_lea.sflag [#allocation4], %s1011_s23 }
 0x3e5   : > { %1363 = dma.done.wait (!%p1272_p4), %s1012_s13, 128  }
 0x3e6   : > { %1365 = vsyncadd (!%p1272_p4), %s1012_s13, 4294967168  ;;  %p19_p5 = scmp.ge.s32.totalorder %s1460_s15, 4   ;;  %s1706_s30 = smov %s1372_s10 }
 0x3e7   : > { %s1707_s10 = smov %s1376_s11  ;;  %s1708_s11 = smov %s1473_s18 }
 0x3e8   : > { %s1709_s12 = smov %s1460_s15  ;;  %21 = sbr.rel (!%p19_p5) target bundleno = 3 (0x3), region = 134 }
 0x3ef   :  { %1017 = vsyncpa [#allocation4], 1 }
 0x3f0   :  { %1019 = vsyncpa [#allocation4 + $0x1], 1 }

</bundles_post_ra>
